<compile_context>
chip_gen: v6e
topology: v6e:2x2x1
jax: 0.10.0
libtpu: 0.0.40
codegen_flags: <defaults>
</compile_context>

<pallas_src>
import functools
import math

import jax
import jax.numpy as jnp
import numpy as np
from jax import lax
from jax.experimental import pallas as pl
from jax.experimental.pallas import tpu as pltpu

# ---- small synthetic config (consistent with CLIPAttention.__init__) ----
B = 2          # batch
T = 8          # sequence length (tgt_len)
E = 32         # hidden_size / embed_dim
H = 4          # num_attention_heads
HD = E // H    # head_dim
SCALE = 1.0 / math.sqrt(math.sqrt(HD))


def _attn_kernel(x_ref, wqkv_ref, bqkv_ref, wout_ref, bout_ref, fused_ref, *,
                 nb, seq, heads, hd):
    """One invocation processes the whole (nb*seq, E) activation slab.

    x_ref     : (nb*seq, E)       activations (activation dtype, no upcast)
    wqkv_ref  : (E, 3E)           qkv_proj.weight.T, Q-cols pre-scaled by SCALE^2
    bqkv_ref  : (1, 3E)           qkv_proj.bias,     Q-cols pre-scaled by SCALE^2
    wout_ref  : (E, E)            out_proj.weight.T
    bout_ref  : (1, E)            out_proj.bias
    fused_ref : (nb*seq, E + heads*seq)
                cols [0, E)           -> attn_output rows
                col  E + h*seq + s    -> softmax weight for (head h, key s)
    """
    x = x_ref[...]                                   # keep activation dtype (bf16-friendly)

    # Fused QKV projection: MXU accumulates in f32, result cast back to the
    # activation dtype (matches torch: qkv_states carry the activation dtype).
    qkv = (jnp.dot(x, wqkv_ref[...], preferred_element_type=jnp.float32)
           + bqkv_ref[...].astype(jnp.float32)).astype(x.dtype)        # (rows, 3E)

    ctx_rows, attn_rows = [], []
    for b in range(nb):                              # static loops; tiny trip counts
        rows = qkv[b * seq:(b + 1) * seq, :]         # (seq, 3E) static slice
        ctx_h, p_h = [], []
        for h in range(heads):
            base = h * 3 * hd
            q = rows[:, base:base + hd]              # (seq, hd); scale already folded in
            k = rows[:, base + hd:base + 2 * hd]
            v = rows[:, base + 2 * hd:base + 3 * hd]

            # q @ k^T without materializing a transpose; f32 scores.
            s = lax.dot_general(q, k, (((1,), (1,)), ((), ())),
                                preferred_element_type=jnp.float32)    # (seq, seq)

            # softmax over keys, fully in f32, EXACT normalization (attn is a
            # returned output and must match the PyTorch probabilities).
            s = s - jnp.max(s, axis=-1, keepdims=True)
            p = jnp.exp(s)
            p = p / jnp.sum(p, axis=-1, keepdims=True)
            p_lo = p.astype(x.dtype)                 # torch casts back to wdtype

            ctx_h.append(jnp.dot(p_lo, v, preferred_element_type=jnp.float32))
            p_h.append(p_lo)

        ctx_rows.append(jnp.concatenate(ctx_h, axis=1))     # (seq, E)  head-major
        attn_rows.append(jnp.concatenate(p_h, axis=1))      # (seq, heads*seq)

    ctx = jnp.concatenate(ctx_rows, axis=0).astype(x.dtype)  # (rows, E)
    attn = jnp.concatenate(attn_rows, axis=0)                 # (rows, heads*seq)

    # Fused output projection + bias (single MXU matmul, f32 accumulation).
    out = (jnp.dot(ctx, wout_ref[...], preferred_element_type=jnp.float32)
           + bout_ref[...].astype(jnp.float32)).astype(fused_ref.dtype)

    # Single, lane-denser store covering both results (one output DMA).
    fused_ref[...] = jnp.concatenate([out, attn.astype(fused_ref.dtype)], axis=1)


def clip_attention_pallas(hidden_states, w_qkv, b_qkv, w_out, b_out):
    """hidden_states: (B, T, E); w_qkv: (3E, E); b_qkv: (3E,); w_out: (E, E); b_out: (E,)."""
    bsz, tgt, emb = hidden_states.shape
    dtype = hidden_states.dtype

    # Fold the constant attention scale (applied to both q and k in torch, i.e.
    # SCALE^2 on the scores) into the Q columns of W_qkv and b_qkv so it costs
    # nothing in-kernel.  Pure layout / constant folding otherwise.
    col_ids = np.arange(3 * emb)
    q_cols = (col_ids % (3 * HD)) < HD
    col_scale = jnp.asarray(np.where(q_cols, SCALE * SCALE, 1.0), dtype=w_qkv.dtype)
    w_qkv_t = (w_qkv * col_scale[:, None]).T            # (E, 3E)
    b_qkv2d = (b_qkv * col_scale).reshape(1, 3 * emb)   # (1, 3E)
    w_out_t = w_out.T                                   # (E, E)
    b_out2d = b_out.reshape(1, emb)                     # (1, E)
    x2d = hidden_states.reshape(bsz * tgt, emb)         # (rows, E)

    rows = bsz * tgt
    fused_width = emb + H * tgt                         # attn_output | attn_weights

    # Single invocation, whole arrays resident in VMEM: no grid -> no pipeline
    # machinery, no double-buffered copies of the invariant weights/biases, and
    # identical behaviour on single-TC (v5e/v6e) and dual-TC (v7x) chips.
    vmem = pl.BlockSpec(memory_space=pltpu.MemorySpace.VMEM)
    fused = pl.pallas_call(
        functools.partial(_attn_kernel, nb=bsz, seq=tgt, heads=H, hd=HD),
        out_shape=jax.ShapeDtypeStruct((rows, fused_width), dtype),
        in_specs=[vmem] * 5,
        out_specs=vmem,
    )(x2d, w_qkv_t, b_qkv2d, w_out_t, b_out2d)

    out = fused[:, :emb].reshape(bsz, tgt, emb)
    # fused[b*T + t, E + h*T + s]  ->  attn[b, h, t, s]
    attn = fused[:, emb:].reshape(bsz, tgt, H, tgt).transpose(0, 2, 1, 3)
    return out, attn


def clip_attention_reference(hidden_states, w_qkv, b_qkv, w_out, b_out):
    """Pure-JAX reference mirroring the PyTorch forward line by line."""
    bsz, tgt_len, embed_dim = hidden_states.shape
    qkv = hidden_states @ w_qkv.T + b_qkv                    # (B, T, 3E)
    qkv = qkv.reshape(bsz, tgt_len, H, 3 * HD)
    q, k, v = qkv[..., :HD], qkv[..., HD:2 * HD], qkv[..., 2 * HD:]
    attn_w = jnp.einsum('bthc,bshc->bhts', q * SCALE, k * SCALE)
    attn_w = jax.nn.softmax(attn_w.astype(jnp.float32), axis=-1).astype(attn_w.dtype)
    attn_o = jnp.einsum('bhts,bshc->bthc', attn_w, v)
    attn_o = attn_o.reshape(bsz, tgt_len, embed_dim)
    attn_o = attn_o @ w_out.T + b_out
    return attn_o, attn_w


if __name__ == "__main__":
    key = jax.random.PRNGKey(0)
    k_x, k_wqkv, k_bqkv, k_wo, k_bo = jax.random.split(key, 5)

    hidden_states = jax.random.normal(k_x, (B, T, E), dtype=jnp.float32)
    # deterministic synthetic parameters (shapes from CLIPAttention.__init__)
    w_qkv = jax.random.normal(k_wqkv, (3 * E, E), dtype=jnp.float32) * 0.05
    b_qkv = jax.random.normal(k_bqkv, (3 * E,), dtype=jnp.float32) * 0.05
    w_out = jax.random.normal(k_wo, (E, E), dtype=jnp.float32) * 0.05
    b_out = jax.random.normal(k_bo, (E,), dtype=jnp.float32) * 0.05

    out, attn = clip_attention_pallas(hidden_states, w_qkv, b_qkv, w_out, b_out)
    jax.block_until_ready((out, attn))

    ref_out, ref_attn = clip_attention_reference(hidden_states, w_qkv, b_qkv, w_out, b_out)

    # Softmax normalization is exact now (no approximate reciprocal): returned
    # attention probabilities must sum to 1.
    row_sums = np.asarray(attn).sum(axis=-1)
    assert np.allclose(row_sums, 1.0, atol=1e-5)

    # Remaining tolerance only budgets for MXU f32 matmul-pass differences vs
    # the XLA reference; the softmax path itself matches PyTorch semantics.
    assert np.allclose(np.asarray(out), np.asarray(ref_out), atol=1e-3, rtol=1e-3)
    assert np.allclose(np.asarray(attn), np.asarray(ref_attn), atol=1e-3, rtol=1e-3)

    print("KERNEL_OK")
</pallas_src>

<mosaic_0001>
module attributes {stable_mosaic.version = 11 : i64} {
  func.func @_attn_kernel(%arg0: memref<16x32xf32, #tpu.memory_space<vmem>>, %arg1: memref<32x96xf32, #tpu.memory_space<vmem>>, %arg2: memref<1x96xf32, #tpu.memory_space<vmem>>, %arg3: memref<32x32xf32, #tpu.memory_space<vmem>>, %arg4: memref<1x32xf32, #tpu.memory_space<vmem>>, %arg5: memref<16x64xf32, #tpu.memory_space<vmem>>) attributes {dimension_semantics = [], scalar_prefetch = 0 : i64, scratch_operands = 0 : i64, tpu.core_type = #tpu.core_type<tc>} {
    %c0 = arith.constant 0 : index
    %c0_0 = arith.constant 0 : index
    %0 = vector.load %arg0[%c0, %c0_0] : memref<16x32xf32, #tpu.memory_space<vmem>>, vector<16x32xf32>
    %c0_1 = arith.constant 0 : index
    %c0_2 = arith.constant 0 : index
    %1 = vector.load %arg1[%c0_1, %c0_2] : memref<32x96xf32, #tpu.memory_space<vmem>>, vector<32x96xf32>
    %cst = arith.constant dense<0.000000e+00> : vector<16x96xf32>
    %2 = tpu.matmul %0, %1, %cst {dimension_numbers = #tpu.dot_dimension_numbers<[1], [0], [0], [1], [0, 0, 1, 1], [], []>} : vector<16x32xf32>, vector<32x96xf32>, vector<16x96xf32> -> vector<16x96xf32>
    %c0_3 = arith.constant 0 : index
    %c0_4 = arith.constant 0 : index
    %3 = vector.load %arg2[%c0_3, %c0_4] : memref<1x96xf32, #tpu.memory_space<vmem>>, vector<1x96xf32>
    %4 = vector.broadcast %3 : vector<1x96xf32> to vector<16x96xf32>
    %5 = arith.addf %2, %4 : vector<16x96xf32>
    %6 = vector.extract_strided_slice %5 {offsets = [0, 0], sizes = [8, 96], strides = [1, 1]} : vector<16x96xf32> to vector<8x96xf32>
    %7 = vector.extract_strided_slice %6 {offsets = [0, 0], sizes = [8, 8], strides = [1, 1]} : vector<8x96xf32> to vector<8x8xf32>
    %8 = vector.extract_strided_slice %6 {offsets = [0, 8], sizes = [8, 8], strides = [1, 1]} : vector<8x96xf32> to vector<8x8xf32>
    %9 = vector.extract_strided_slice %6 {offsets = [0, 16], sizes = [8, 8], strides = [1, 1]} : vector<8x96xf32> to vector<8x8xf32>
    %cst_5 = arith.constant dense<0.000000e+00> : vector<8x8xf32>
    %10 = tpu.matmul %7, %8, %cst_5 {dimension_numbers = #tpu.dot_dimension_numbers<[1], [1], [0], [0], [0, 0, 1, 0], [], []>} : vector<8x8xf32>, vector<8x8xf32>, vector<8x8xf32> -> vector<8x8xf32>
    %cst_6 = arith.constant dense<0xFF800000> : vector<8xf32>
    %11 = vector.multi_reduction <maximumf>, %10, %cst_6 [1] : vector<8x8xf32> to vector<8xf32>
    %12 = vector.shape_cast %11 : vector<8xf32> to vector<8x1xf32>
    %13 = vector.broadcast %12 : vector<8x1xf32> to vector<8x8xf32>
    %14 = arith.subf %10, %13 : vector<8x8xf32>
    %15 = math.exp %14 : vector<8x8xf32>
    %cst_7 = arith.constant dense<0.000000e+00> : vector<8xf32>
    %16 = vector.multi_reduction <add>, %15, %cst_7 [1] : vector<8x8xf32> to vector<8xf32>
    %17 = vector.shape_cast %16 : vector<8xf32> to vector<8x1xf32>
    %18 = vector.broadcast %17 : vector<8x1xf32> to vector<8x8xf32>
    %19 = arith.divf %15, %18 : vector<8x8xf32>
    %cst_8 = arith.constant dense<0.000000e+00> : vector<8x8xf32>
    %20 = tpu.matmul %19, %9, %cst_8 {dimension_numbers = #tpu.dot_dimension_numbers<[1], [0], [0], [1], [0, 0, 1, 1], [], []>} : vector<8x8xf32>, vector<8x8xf32>, vector<8x8xf32> -> vector<8x8xf32>
    %21 = vector.extract_strided_slice %6 {offsets = [0, 24], sizes = [8, 8], strides = [1, 1]} : vector<8x96xf32> to vector<8x8xf32>
    %22 = vector.extract_strided_slice %6 {offsets = [0, 32], sizes = [8, 8], strides = [1, 1]} : vector<8x96xf32> to vector<8x8xf32>
    %23 = vector.extract_strided_slice %6 {offsets = [0, 40], sizes = [8, 8], strides = [1, 1]} : vector<8x96xf32> to vector<8x8xf32>
    %cst_9 = arith.constant dense<0.000000e+00> : vector<8x8xf32>
    %24 = tpu.matmul %21, %22, %cst_9 {dimension_numbers = #tpu.dot_dimension_numbers<[1], [1], [0], [0], [0, 0, 1, 0], [], []>} : vector<8x8xf32>, vector<8x8xf32>, vector<8x8xf32> -> vector<8x8xf32>
    %cst_10 = arith.constant dense<0xFF800000> : vector<8xf32>
    %25 = vector.multi_reduction <maximumf>, %24, %cst_10 [1] : vector<8x8xf32> to vector<8xf32>
    %26 = vector.shape_cast %25 : vector<8xf32> to vector<8x1xf32>
    %27 = vector.broadcast %26 : vector<8x1xf32> to vector<8x8xf32>
    %28 = arith.subf %24, %27 : vector<8x8xf32>
    %29 = math.exp %28 : vector<8x8xf32>
    %cst_11 = arith.constant dense<0.000000e+00> : vector<8xf32>
    %30 = vector.multi_reduction <add>, %29, %cst_11 [1] : vector<8x8xf32> to vector<8xf32>
    %31 = vector.shape_cast %30 : vector<8xf32> to vector<8x1xf32>
    %32 = vector.broadcast %31 : vector<8x1xf32> to vector<8x8xf32>
    %33 = arith.divf %29, %32 : vector<8x8xf32>
    %cst_12 = arith.constant dense<0.000000e+00> : vector<8x8xf32>
    %34 = tpu.matmul %33, %23, %cst_12 {dimension_numbers = #tpu.dot_dimension_numbers<[1], [0], [0], [1], [0, 0, 1, 1], [], []>} : vector<8x8xf32>, vector<8x8xf32>, vector<8x8xf32> -> vector<8x8xf32>
    %35 = vector.extract_strided_slice %6 {offsets = [0, 48], sizes = [8, 8], strides = [1, 1]} : vector<8x96xf32> to vector<8x8xf32>
    %36 = vector.extract_strided_slice %6 {offsets = [0, 56], sizes = [8, 8], strides = [1, 1]} : vector<8x96xf32> to vector<8x8xf32>
    %37 = vector.extract_strided_slice %6 {offsets = [0, 64], sizes = [8, 8], strides = [1, 1]} : vector<8x96xf32> to vector<8x8xf32>
    %cst_13 = arith.constant dense<0.000000e+00> : vector<8x8xf32>
    %38 = tpu.matmul %35, %36, %cst_13 {dimension_numbers = #tpu.dot_dimension_numbers<[1], [1], [0], [0], [0, 0, 1, 0], [], []>} : vector<8x8xf32>, vector<8x8xf32>, vector<8x8xf32> -> vector<8x8xf32>
    %cst_14 = arith.constant dense<0xFF800000> : vector<8xf32>
    %39 = vector.multi_reduction <maximumf>, %38, %cst_14 [1] : vector<8x8xf32> to vector<8xf32>
    %40 = vector.shape_cast %39 : vector<8xf32> to vector<8x1xf32>
    %41 = vector.broadcast %40 : vector<8x1xf32> to vector<8x8xf32>
    %42 = arith.subf %38, %41 : vector<8x8xf32>
    %43 = math.exp %42 : vector<8x8xf32>
    %cst_15 = arith.constant dense<0.000000e+00> : vector<8xf32>
    %44 = vector.multi_reduction <add>, %43, %cst_15 [1] : vector<8x8xf32> to vector<8xf32>
    %45 = vector.shape_cast %44 : vector<8xf32> to vector<8x1xf32>
    %46 = vector.broadcast %45 : vector<8x1xf32> to vector<8x8xf32>
    %47 = arith.divf %43, %46 : vector<8x8xf32>
    %cst_16 = arith.constant dense<0.000000e+00> : vector<8x8xf32>
    %48 = tpu.matmul %47, %37, %cst_16 {dimension_numbers = #tpu.dot_dimension_numbers<[1], [0], [0], [1], [0, 0, 1, 1], [], []>} : vector<8x8xf32>, vector<8x8xf32>, vector<8x8xf32> -> vector<8x8xf32>
    %49 = vector.extract_strided_slice %6 {offsets = [0, 72], sizes = [8, 8], strides = [1, 1]} : vector<8x96xf32> to vector<8x8xf32>
    %50 = vector.extract_strided_slice %6 {offsets = [0, 80], sizes = [8, 8], strides = [1, 1]} : vector<8x96xf32> to vector<8x8xf32>
    %51 = vector.extract_strided_slice %6 {offsets = [0, 88], sizes = [8, 8], strides = [1, 1]} : vector<8x96xf32> to vector<8x8xf32>
    %cst_17 = arith.constant dense<0.000000e+00> : vector<8x8xf32>
    %52 = tpu.matmul %49, %50, %cst_17 {dimension_numbers = #tpu.dot_dimension_numbers<[1], [1], [0], [0], [0, 0, 1, 0], [], []>} : vector<8x8xf32>, vector<8x8xf32>, vector<8x8xf32> -> vector<8x8xf32>
    %cst_18 = arith.constant dense<0xFF800000> : vector<8xf32>
    %53 = vector.multi_reduction <maximumf>, %52, %cst_18 [1] : vector<8x8xf32> to vector<8xf32>
    %54 = vector.shape_cast %53 : vector<8xf32> to vector<8x1xf32>
    %55 = vector.broadcast %54 : vector<8x1xf32> to vector<8x8xf32>
    %56 = arith.subf %52, %55 : vector<8x8xf32>
    %57 = math.exp %56 : vector<8x8xf32>
    %cst_19 = arith.constant dense<0.000000e+00> : vector<8xf32>
    %58 = vector.multi_reduction <add>, %57, %cst_19 [1] : vector<8x8xf32> to vector<8xf32>
    %59 = vector.shape_cast %58 : vector<8xf32> to vector<8x1xf32>
    %60 = vector.broadcast %59 : vector<8x1xf32> to vector<8x8xf32>
    %61 = arith.divf %57, %60 : vector<8x8xf32>
    %cst_20 = arith.constant dense<0.000000e+00> : vector<8x8xf32>
    %62 = tpu.matmul %61, %51, %cst_20 {dimension_numbers = #tpu.dot_dimension_numbers<[1], [0], [0], [1], [0, 0, 1, 1], [], []>} : vector<8x8xf32>, vector<8x8xf32>, vector<8x8xf32> -> vector<8x8xf32>
    %63 = tpu.concatenate %20, %34, %48, %62 in 1 : vector<8x8xf32>, vector<8x8xf32>, vector<8x8xf32>, vector<8x8xf32> -> vector<8x32xf32>
    %64 = tpu.concatenate %19, %33, %47, %61 in 1 : vector<8x8xf32>, vector<8x8xf32>, vector<8x8xf32>, vector<8x8xf32> -> vector<8x32xf32>
    %65 = vector.extract_strided_slice %5 {offsets = [8, 0], sizes = [8, 96], strides = [1, 1]} : vector<16x96xf32> to vector<8x96xf32>
    %66 = vector.extract_strided_slice %65 {offsets = [0, 0], sizes = [8, 8], strides = [1, 1]} : vector<8x96xf32> to vector<8x8xf32>
    %67 = vector.extract_strided_slice %65 {offsets = [0, 8], sizes = [8, 8], strides = [1, 1]} : vector<8x96xf32> to vector<8x8xf32>
    %68 = vector.extract_strided_slice %65 {offsets = [0, 16], sizes = [8, 8], strides = [1, 1]} : vector<8x96xf32> to vector<8x8xf32>
    %cst_21 = arith.constant dense<0.000000e+00> : vector<8x8xf32>
    %69 = tpu.matmul %66, %67, %cst_21 {dimension_numbers = #tpu.dot_dimension_numbers<[1], [1], [0], [0], [0, 0, 1, 0], [], []>} : vector<8x8xf32>, vector<8x8xf32>, vector<8x8xf32> -> vector<8x8xf32>
    %cst_22 = arith.constant dense<0xFF800000> : vector<8xf32>
    %70 = vector.multi_reduction <maximumf>, %69, %cst_22 [1] : vector<8x8xf32> to vector<8xf32>
    %71 = vector.shape_cast %70 : vector<8xf32> to vector<8x1xf32>
    %72 = vector.broadcast %71 : vector<8x1xf32> to vector<8x8xf32>
    %73 = arith.subf %69, %72 : vector<8x8xf32>
    %74 = math.exp %73 : vector<8x8xf32>
    %cst_23 = arith.constant dense<0.000000e+00> : vector<8xf32>
    %75 = vector.multi_reduction <add>, %74, %cst_23 [1] : vector<8x8xf32> to vector<8xf32>
    %76 = vector.shape_cast %75 : vector<8xf32> to vector<8x1xf32>
    %77 = vector.broadcast %76 : vector<8x1xf32> to vector<8x8xf32>
    %78 = arith.divf %74, %77 : vector<8x8xf32>
    %cst_24 = arith.constant dense<0.000000e+00> : vector<8x8xf32>
    %79 = tpu.matmul %78, %68, %cst_24 {dimension_numbers = #tpu.dot_dimension_numbers<[1], [0], [0], [1], [0, 0, 1, 1], [], []>} : vector<8x8xf32>, vector<8x8xf32>, vector<8x8xf32> -> vector<8x8xf32>
    %80 = vector.extract_strided_slice %65 {offsets = [0, 24], sizes = [8, 8], strides = [1, 1]} : vector<8x96xf32> to vector<8x8xf32>
    %81 = vector.extract_strided_slice %65 {offsets = [0, 32], sizes = [8, 8], strides = [1, 1]} : vector<8x96xf32> to vector<8x8xf32>
    %82 = vector.extract_strided_slice %65 {offsets = [0, 40], sizes = [8, 8], strides = [1, 1]} : vector<8x96xf32> to vector<8x8xf32>
    %cst_25 = arith.constant dense<0.000000e+00> : vector<8x8xf32>
    %83 = tpu.matmul %80, %81, %cst_25 {dimension_numbers = #tpu.dot_dimension_numbers<[1], [1], [0], [0], [0, 0, 1, 0], [], []>} : vector<8x8xf32>, vector<8x8xf32>, vector<8x8xf32> -> vector<8x8xf32>
    %cst_26 = arith.constant dense<0xFF800000> : vector<8xf32>
    %84 = vector.multi_reduction <maximumf>, %83, %cst_26 [1] : vector<8x8xf32> to vector<8xf32>
    %85 = vector.shape_cast %84 : vector<8xf32> to vector<8x1xf32>
    %86 = vector.broadcast %85 : vector<8x1xf32> to vector<8x8xf32>
    %87 = arith.subf %83, %86 : vector<8x8xf32>
    %88 = math.exp %87 : vector<8x8xf32>
    %cst_27 = arith.constant dense<0.000000e+00> : vector<8xf32>
    %89 = vector.multi_reduction <add>, %88, %cst_27 [1] : vector<8x8xf32> to vector<8xf32>
    %90 = vector.shape_cast %89 : vector<8xf32> to vector<8x1xf32>
    %91 = vector.broadcast %90 : vector<8x1xf32> to vector<8x8xf32>
    %92 = arith.divf %88, %91 : vector<8x8xf32>
    %cst_28 = arith.constant dense<0.000000e+00> : vector<8x8xf32>
    %93 = tpu.matmul %92, %82, %cst_28 {dimension_numbers = #tpu.dot_dimension_numbers<[1], [0], [0], [1], [0, 0, 1, 1], [], []>} : vector<8x8xf32>, vector<8x8xf32>, vector<8x8xf32> -> vector<8x8xf32>
    %94 = vector.extract_strided_slice %65 {offsets = [0, 48], sizes = [8, 8], strides = [1, 1]} : vector<8x96xf32> to vector<8x8xf32>
    %95 = vector.extract_strided_slice %65 {offsets = [0, 56], sizes = [8, 8], strides = [1, 1]} : vector<8x96xf32> to vector<8x8xf32>
    %96 = vector.extract_strided_slice %65 {offsets = [0, 64], sizes = [8, 8], strides = [1, 1]} : vector<8x96xf32> to vector<8x8xf32>
    %cst_29 = arith.constant dense<0.000000e+00> : vector<8x8xf32>
    %97 = tpu.matmul %94, %95, %cst_29 {dimension_numbers = #tpu.dot_dimension_numbers<[1], [1], [0], [0], [0, 0, 1, 0], [], []>} : vector<8x8xf32>, vector<8x8xf32>, vector<8x8xf32> -> vector<8x8xf32>
    %cst_30 = arith.constant dense<0xFF800000> : vector<8xf32>
    %98 = vector.multi_reduction <maximumf>, %97, %cst_30 [1] : vector<8x8xf32> to vector<8xf32>
    %99 = vector.shape_cast %98 : vector<8xf32> to vector<8x1xf32>
    %100 = vector.broadcast %99 : vector<8x1xf32> to vector<8x8xf32>
    %101 = arith.subf %97, %100 : vector<8x8xf32>
    %102 = math.exp %101 : vector<8x8xf32>
    %cst_31 = arith.constant dense<0.000000e+00> : vector<8xf32>
    %103 = vector.multi_reduction <add>, %102, %cst_31 [1] : vector<8x8xf32> to vector<8xf32>
    %104 = vector.shape_cast %103 : vector<8xf32> to vector<8x1xf32>
    %105 = vector.broadcast %104 : vector<8x1xf32> to vector<8x8xf32>
    %106 = arith.divf %102, %105 : vector<8x8xf32>
    %cst_32 = arith.constant dense<0.000000e+00> : vector<8x8xf32>
    %107 = tpu.matmul %106, %96, %cst_32 {dimension_numbers = #tpu.dot_dimension_numbers<[1], [0], [0], [1], [0, 0, 1, 1], [], []>} : vector<8x8xf32>, vector<8x8xf32>, vector<8x8xf32> -> vector<8x8xf32>
    %108 = vector.extract_strided_slice %65 {offsets = [0, 72], sizes = [8, 8], strides = [1, 1]} : vector<8x96xf32> to vector<8x8xf32>
    %109 = vector.extract_strided_slice %65 {offsets = [0, 80], sizes = [8, 8], strides = [1, 1]} : vector<8x96xf32> to vector<8x8xf32>
    %110 = vector.extract_strided_slice %65 {offsets = [0, 88], sizes = [8, 8], strides = [1, 1]} : vector<8x96xf32> to vector<8x8xf32>
    %cst_33 = arith.constant dense<0.000000e+00> : vector<8x8xf32>
    %111 = tpu.matmul %108, %109, %cst_33 {dimension_numbers = #tpu.dot_dimension_numbers<[1], [1], [0], [0], [0, 0, 1, 0], [], []>} : vector<8x8xf32>, vector<8x8xf32>, vector<8x8xf32> -> vector<8x8xf32>
    %cst_34 = arith.constant dense<0xFF800000> : vector<8xf32>
    %112 = vector.multi_reduction <maximumf>, %111, %cst_34 [1] : vector<8x8xf32> to vector<8xf32>
    %113 = vector.shape_cast %112 : vector<8xf32> to vector<8x1xf32>
    %114 = vector.broadcast %113 : vector<8x1xf32> to vector<8x8xf32>
    %115 = arith.subf %111, %114 : vector<8x8xf32>
    %116 = math.exp %115 : vector<8x8xf32>
    %cst_35 = arith.constant dense<0.000000e+00> : vector<8xf32>
    %117 = vector.multi_reduction <add>, %116, %cst_35 [1] : vector<8x8xf32> to vector<8xf32>
    %118 = vector.shape_cast %117 : vector<8xf32> to vector<8x1xf32>
    %119 = vector.broadcast %118 : vector<8x1xf32> to vector<8x8xf32>
    %120 = arith.divf %116, %119 : vector<8x8xf32>
    %cst_36 = arith.constant dense<0.000000e+00> : vector<8x8xf32>
    %121 = tpu.matmul %120, %110, %cst_36 {dimension_numbers = #tpu.dot_dimension_numbers<[1], [0], [0], [1], [0, 0, 1, 1], [], []>} : vector<8x8xf32>, vector<8x8xf32>, vector<8x8xf32> -> vector<8x8xf32>
    %122 = tpu.concatenate %79, %93, %107, %121 in 1 : vector<8x8xf32>, vector<8x8xf32>, vector<8x8xf32>, vector<8x8xf32> -> vector<8x32xf32>
    %123 = tpu.concatenate %78, %92, %106, %120 in 1 : vector<8x8xf32>, vector<8x8xf32>, vector<8x8xf32>, vector<8x8xf32> -> vector<8x32xf32>
    %124 = tpu.concatenate %63, %122 in 0 : vector<8x32xf32>, vector<8x32xf32> -> vector<16x32xf32>
    %125 = tpu.concatenate %64, %123 in 0 : vector<8x32xf32>, vector<8x32xf32> -> vector<16x32xf32>
    %c0_37 = arith.constant 0 : index
    %c0_38 = arith.constant 0 : index
    %126 = vector.load %arg3[%c0_37, %c0_38] : memref<32x32xf32, #tpu.memory_space<vmem>>, vector<32x32xf32>
    %cst_39 = arith.constant dense<0.000000e+00> : vector<16x32xf32>
    %127 = tpu.matmul %124, %126, %cst_39 {dimension_numbers = #tpu.dot_dimension_numbers<[1], [0], [0], [1], [0, 0, 1, 1], [], []>} : vector<16x32xf32>, vector<32x32xf32>, vector<16x32xf32> -> vector<16x32xf32>
    %c0_40 = arith.constant 0 : index
    %c0_41 = arith.constant 0 : index
    %128 = vector.load %arg4[%c0_40, %c0_41] : memref<1x32xf32, #tpu.memory_space<vmem>>, vector<1x32xf32>
    %129 = vector.broadcast %128 : vector<1x32xf32> to vector<16x32xf32>
    %130 = arith.addf %127, %129 : vector<16x32xf32>
    %131 = tpu.concatenate %130, %125 in 1 : vector<16x32xf32>, vector<16x32xf32> -> vector<16x64xf32>
    %c0_42 = arith.constant 0 : index
    %c0_43 = arith.constant 0 : index
    %132 = vector.load %arg5[%c0_42, %c0_43] : memref<16x64xf32, #tpu.memory_space<vmem>>, vector<16x64xf32>
    tpu.vector_store %arg5[%c0_42, %c0_43], %131 {strides = array<i32>} : memref<16x64xf32, #tpu.memory_space<vmem>>, vector<16x64xf32>,
    return
  }
}

</mosaic_0001>

<bundles_post_ra>
// kernel: tpu_custom_call.1
= control target key start
LH: loop header
LB: loop body
LE: loop exit
PB: predicated region body
PF: predicated region fallthrough
CT: control target
= control target key end

     0   :  { %10 = vsyncpa [#allocation3], 0  ;;  %s2256_s0 = inlined_call_operand.hbm [shape: f32[16,32], index: 0, kind: input, shape index: {}]   ;;  %s2257_s1 = inlined_call_operand.hbm [shape: f32[32,96], index: 1, kind: input, shape index: {}]   ;;  %s2258_s2 = inlined_call_operand.vmem [shape: f32[1,96], index: 2, kind: input, shape index: {}]   ;;  %s2259_s3 = inlined_call_operand.hbm [shape: f32[32,32], index: 3, kind: input, shape index: {}]   ;;  %s2260_s4 = inlined_call_operand.vmem [shape: f32[1,32], index: 4, kind: input, shape index: {}]   ;;  %s2261_s5 = inlined_call_operand.hbm [shape: f32[16,64], index: 5, kind: output, shape index: {}]  }
   0x1   :  { %11 = vsyncpa [#allocation6], 0 }
   0x2   :  { %12 = vsyncpa [#allocation4], 0  ;;  %s1971_s18 = smov [#allocation5]   ;;  %s1972_s20 = smov [#allocation2]  }
   0x3   :  { %s30_s19 = sshll.u32 %s1971_s18, 4  ;;  %s18_s21 = sshll.u32 %s1972_s20, 4  ;;  %s31_s19 = int_to_ptr.vmem [resolvable:$true] %s30_s19  ;;  %s19_s21 = int_to_ptr.vmem [resolvable:$true] %s18_s21 }
   0x4   :  { %s1893_s22 = scalar_lea.vmem %s31_s19, 512  ;;  %p1898_p1 = scmp.lt.s32.totalorder %s31_s19, %s31_s19 }
   0x5   :  { %p1894_p0 = scmp.ne.s32.totalorder %s31_s19, %s1893_s22  ;;  %p1899_p2 = scmp.lt.s32.totalorder %s1893_s22, %s1893_s22 }
   0x7   :  { %p1900_p3 = por %p1899_p2, %p1898_p1 }
   0x9   :  { %p1901_p4 = pnand %p1900_p3, %p1894_p0 }
   0xb   :  { %1904 = shalt.err (!%p1901_p4)
}
   0xc   :  { %s1973_s23 = smov 128   ;;  %s1974_s24 = smov 8  }
   0xd   :  { %36 = dma.hbm_to_vmem [thread:$0]  %s2257_s1, 512, %s31_s19, [#allocation6], %s1973_s23, %s1973_s23, %s1974_s24  }
   0xe   :  { %s1913_s27 = scalar_lea.vmem %s19_s21, 256  ;;  %p1918_p6 = scmp.lt.s32.totalorder %s19_s21, %s19_s21 }
   0xf   :  { %p1914_p5 = scmp.ne.s32.totalorder %s19_s21, %s1913_s27  ;;  %p1919_p7 = scmp.lt.s32.totalorder %s1913_s27, %s1913_s27 }
  0x11   :  { %p1920_p8 = por %p1919_p7, %p1918_p6 }
  0x13   :  { %p1921_p9 = pnand %p1920_p8, %p1914_p5 }
  0x15   :  { %1924 = shalt.err (!%p1921_p9)
}
  0x16   :  { %24 = dma.hbm_to_vmem [thread:$0]  %s2256_s0, 256, %s19_s21, [#allocation3], %s1973_s23, %s1973_s23, %s1974_s24  }
  0x17   :  { %s1975_s30 = smov [#allocation7]  }
  0x18   :  { %s44_s6 = sshll.u32 %s1975_s30, 4  ;;  %s45_s6 = int_to_ptr.vmem [resolvable:$true] %s44_s6 }
  0x19   :  { %s1933_s7 = scalar_lea.vmem %s45_s6, 512  ;;  %p1938_p11 = scmp.lt.s32.totalorder %s45_s6, %s45_s6 }
  0x1a   :  { %p1934_p10 = scmp.ne.s32.totalorder %s45_s6, %s1933_s7  ;;  %p1939_p12 = scmp.lt.s32.totalorder %s1933_s7, %s1933_s7 }
  0x1c   :  { %p1940_p13 = por %p1939_p12, %p1938_p11 }
  0x1e   :  { %p1941_p0 = pnand %p1940_p13, %p1934_p10 }
  0x20   :  { %1944 = shalt.err (!%p1941_p0)
}
  0x21   :  { %50 = dma.hbm_to_vmem [thread:$0]  %s2259_s3, 512, %s45_s6, [#allocation6], %s1973_s23, %s1973_s23, %s1974_s24  }
  0x22   :  { %1965 = dma.done.wait [#allocation3], 256  }
  0x23   :  { %1966 = vsyncadd [#allocation3], 4294967040 }
  0x24   :  { %1967 = dma.done.wait [#allocation6], 1024  }
  0x25   :  { %1968 = vsyncadd [#allocation6], 4294966272  ;;  %vm75_vm0 = vcmask 261120   ;;  %v67_v0 = vld [vmem:[#allocation5 + $0x18] sm:$0xff]  ;;  %v66_v1 = vld [vmem:[#allocation5 + $0x10] sm:$0xff]  ;;  %v1976_v6 = vmov 0.0  }
  0x26   :  { %1729 = vmatprep.subr.mxu0 %v67_v0  ;;  %v62_v2 = vld [vmem:[#allocation2] sm:$0xff]  ;;  %v65_v3 = vld [vmem:[#allocation5 + $0x8] sm:$0xff]  ;;  %v64_v4 = vld [vmem:[#allocation5] sm:$0xff]  ;;  %1740 = vmatprep.subr.mxu1 %v1976_v6  ;;  %vm1977_vm1 = vmmov 0   ;;  %s1978_s9 = smov 112   ;;  %s1979_s10 = smov 120  }
  0x27   :  { %1730 = vmatpush3.msra.mxu0 %v67_v0  ;;  %1737 = vmatprep.mubr.msk.f32.mxu0 %vm75_vm0, %v62_v2  ;;  %v63_v5 = vld [vmem:[#allocation2 + $0x8] sm:$0xff]  ;;  %v1655_v7 = vld [vmem:[%s2258_s2] ss:$0 sm:$0xff]  ;;  %s1980_s11 = smov 96   ;;  %s1981_s12 = smov 104   ;;  %vm160_vm2 = vcmask 64512  }
  0x28   :  { %1731 = vmatprep.subr.mxu0 %v66_v1  ;;  %1742 = vmatprep.mubr.msk.f32.mxu1 %vm1977_vm1, %v1976_v6  ;;  %s1982_s2 = smov 72   ;;  %s1983_s13 = smov 80   ;;  %vm830_vm3 = vcmask 130048   ;;  %vm832_vm4 = vcmask 195584   ;;  %vm1634_vm5 = vcmask 523264  }
  0x29   :  { %1732 = vmatpush3.msra.mxu0 %v66_v1  ;;  %s1984_s14 = smov 48   ;;  %s1985_s15 = smov 56  }
  0x2a   :  { %1733 = vmatprep.subr.mxu0 %v65_v3  ;;  %s1986_s16 = smov 64   ;;  %s1987_s17 = smov 88  }
  0x2b   :  { %1734 = vmatpush3.msra.mxu0 %v65_v3  ;;  %s1988_s18 = smov 40   ;;  %s1989_s19 = smov 16  }
  0x2c   :  { %1735 = vmatprep.subr.mxu0 %v64_v4  ;;  %s1990_s20 = smov 24   ;;  %s1991_s21 = smov 32  }
  0x2d   :  { %1736 = vmatpush3.msra.mxu0 %v64_v4  ;;  %s1992_s26 = smov [#allocation8]  }
  0x2e   :  { %1738 = vmatmul.mubr.msk.f32.vlgmr.msra.gmra.mxu0 %vm75_vm0, %v63_v5  ;;  %1760 = vmatprep.subr.mxu0 %v1976_v6  ;;  %s1642_s27 = sshll.u32 %s1992_s26, 4  ;;  %s1643_s27 = int_to_ptr.vmem [resolvable:$true] %s1642_s27 }
  0x2f   :  { %1762 = vmatprep.mubr.msk.f32.mxu0 %vm1977_vm1, %v1976_v6  ;;  %s1945_s28 = scalar_lea.vmem %s1643_s27, 256  ;;  %p1950_p2 = scmp.lt.s32.totalorder %s1643_s27, %s1643_s27 }
  0x30   :  { %p1946_p1 = scmp.ne.s32.totalorder %s1643_s27, %s1945_s28  ;;  %p1951_p3 = scmp.lt.s32.totalorder %s1945_s28, %s1945_s28 }
  0x32   :  { %p1952_p4 = por %p1951_p3, %p1950_p2 }
  0x34   :  { %p1953_p5 = pnand %p1952_p4, %p1946_p1 }
  0xee   :  { %v1739_v8 = vpop.f32.mrf.mxu0 }
  0xef   :  { %v2052_v9 = vadd.f32 %v1739_v8, %v1655_v7 }
  0xf0   :  { %v148_v10 = vpop.f32.mrf.mxu0 }
  0xf1   :  { %v2054_v11 = vadd.f32 %v1655_v7, %v148_v10 }
  0xf3   :  { %246 = vrot.lane.b32.xlu1 %v2054_v11, %s1978_s9  ;;  %158 = vrot.lane.b32.xlu0 %v2054_v11, %s1979_s10 }
  0xf7   :  { %324 = vrot.lane.b32.xlu1 %v2054_v11, %s1980_s11 }
  0xfb   :  { %322 = vrot.lane.b32.xlu1 %v2054_v11, %s1981_s12 }
  0xff   :  { %489 = vrot.lane.b32.xlu1 %v2054_v11, %s1982_s2 }
 0x103   :  { %487 = vrot.lane.b32.xlu1 %v2054_v11, %s1983_s13 }
 0x165   :  { %v247_v12 = vpop.permute.xlu1 %246  ;;  %v159_v13 = vpop.permute.xlu0 %158 }
 0x166   :  { %1741 = vmatpush3.xpose.msk.msra.mxu1 %vm160_vm2, %v159_v13 }
 0x167   :  { %1745 = vmatprep.subr.mxu1 %v1976_v6 }
 0x169   :  { %v325_v14 = vpop.permute.xlu1 %324  ;;  %1743 = vmatmul.mubr.msk.f32.vlgmr.msra.gmra.mxu1 %vm160_vm2, %v2054_v11 }
 0x16a   :  { %1746 = vmatpush3.msra.mxu1 %v247_v12  ;;  %1747 = vmatprep.mubr.msk.f32.mxu1 %vm1977_vm1, %v1976_v6 }
 0x16b   :  { %1750 = vmatprep.subr.mxu1 %v1976_v6 }
 0x16d   :  { %v323_v15 = vpop.permute.xlu1 %322 }
 0x171   :  { %v490_v16 = vpop.permute.xlu1 %489 }
 0x172   :  { %1761 = vmatpush3.xpose.msk.msra.mxu0 %vm160_vm2, %v490_v16 }
 0x173   :  { %1770 = vmatprep.subr.mxu0 %v1976_v6 }
 0x175   :  { %v488_v17 = vpop.permute.xlu1 %487 }
 0x176   :  { %1763 = vmatmul.mubr.msk.f32.vlgmr.msra.gmra.mxu0 %vm160_vm2, %v488_v17 }
 0x177   :  { %1772 = vmatprep.mubr.msk.f32.mxu0 %vm1977_vm1, %v1976_v6 }
 0x229   :  { %v231_v18 = vpop.f32.mrf.mxu1 }
 0x22a   :  { %v235_v19 = vsel %vm160_vm2, %v231_v18, -inf }
 0x22b   :  { %236 = vmax.xlane.f32.xlu0 %v235_v19  ;;  %v1744_v20 = vpop.f32.mrf.mxu1 }
 0x236   :  { %v2080_v21 = vpop.f32.mrf.mxu0 }
 0x237   :  { %v565_v23 = vsel %vm160_vm2, %v2080_v21, -inf }
 0x238   :  { %v1764_v22 = vpop.f32.mrf.mxu0 }
 0x241   :  { %654 = vrot.lane.b32.xlu0 %v2054_v11, %s1984_s14 }
 0x245   :  { %1175 = vrot.lane.b32.xlu0 %v2052_v9, %s1983_s13 }
 0x249   :  { %1340 = vrot.lane.b32.xlu0 %v2052_v9, %s1985_s15 }
 0x268   :  { %566 = vmax.xlane.f32.xlu0 %v565_v23 }
 0x2b4   :  { %v237_v24 = vpop.xlane.xlu0 %236 }
 0x2b5   :  { %v238_v25 = vsub.f32 %v231_v18, %v237_v24 }
 0x2b7   :  { %v239_v26 = vmul.f32 1.442695, %v238_v25 }
 0x2b8   :  { %v655_v27 = vpop.permute.xlu0 %654 }
 0x2b9   :  { %1853 = vpow2.f32 %v239_v26  ;;  %1771 = vmatpush3.xpose.msk.msra.mxu0 %vm160_vm2, %v655_v27 }
 0x2ba   :  { %1780 = vmatprep.subr.mxu0 %v1976_v6 }
 0x2bc   :  { %v1176_v38 = vpop.permute.xlu0 %1175 }
 0x2c0   :  { %v1341_v40 = vpop.permute.xlu0 %1340 }
 0x2c6   :  { %v1854_v28 = vpop.eup %1853 }
 0x2c7   :  { %v241_v29 = vsel %vm160_vm2, %v1854_v28, 0.0 }
 0x2c8   :  { %242 = vadd.xlane.f32.xlu1 %v241_v29 }
 0x2d9   :  { %652 = vrot.lane.b32.xlu1 %v2054_v11, %s1985_s15 }
 0x2dd   :  { %847 = vrot.lane.b32.xlu1 %v2052_v9, %s1979_s10 }
 0x2e1   :  { %1012 = vrot.lane.b32.xlu1 %v2052_v9, %s1980_s11 }
 0x2e5   :  { %1010 = vrot.lane.b32.xlu1 %v2052_v9, %s1981_s12 }
 0x2e9   :  { %1177 = vrot.lane.b32.xlu1 %v2052_v9, %s1982_s2 }
 0x2ed   :  { %1342 = vrot.lane.b32.xlu1 %v2052_v9, %s1984_s14 }
 0x2f1   :  { %v567_v42 = vpop.xlane.xlu0 %566 }
 0x2f2   :  { %v568_v45 = vsub.f32 %v2080_v21, %v567_v42 }
 0x2f4   :  { %v569_v47 = vmul.f32 1.442695, %v568_v45 }
 0x351   :  { %v243_v30 = vpop.xlane.xlu1 %242 }
 0x352   :  { %1855 = vrcp.f32 %v243_v30 }
 0x353   :  { %1857 = vpow2.f32 %v569_v47 }
 0x355   :  { %v653_v31 = vpop.permute.xlu1 %652 }
 0x356   :  { %1773 = vmatmul.mubr.msk.f32.vlgmr.msra.gmra.mxu0 %vm160_vm2, %v653_v31 }
 0x357   :  { %1782 = vmatprep.mubr.msk.f32.mxu0 %vm1977_vm1, %v1976_v6 }
 0x359   :  { %v848_v32 = vpop.permute.xlu1 %847 }
 0x35a   :  { %1781 = vmatpush3.xpose.msk.msra.mxu0 %vm160_vm2, %v848_v32 }
 0x35b   :  { %1790 = vmatprep.subr.mxu0 %v1976_v6 }
 0x35d   :  { %v1013_v33 = vpop.permute.xlu1 %1012  ;;  %1783 = vmatmul.mubr.msk.f32.vlgmr.msra.gmra.mxu0 %vm160_vm2, %v2052_v9 }
 0x35e   :  { %1791 = vmatpush3.xpose.msk.msra.mxu0 %vm160_vm2, %v1013_v33  ;;  %1792 = vmatprep.mubr.msk.f32.mxu0 %vm1977_vm1, %v1976_v6 }
 0x35f   :  { %v1856_v34 = vpop.eup %1855  ;;  %1800 = vmatprep.subr.mxu0 %v1976_v6 }
 0x360   :  { %v2111_v35 = vmul.f32 %v1856_v34, %v1854_v28  ;;  %v2140_v62 = vpop.eup %1857 }
 0x361   :  { %v1011_v36 = vpop.permute.xlu1 %1010  ;;  %v571_v1 = vsel %vm160_vm2, %v2140_v62, 0.0 }
 0x362   :  { %1748 = vmatmul.mubr.msk.f32.vlgmr.msra.gmra.mxu1 %vm160_vm2, %v2111_v35  ;;  %1793 = vmatmul.mubr.msk.f32.vlgmr.msra.gmra.mxu0 %vm160_vm2, %v1011_v36 }
 0x363   :  { %1751 = vmatpush3.xpose.msk.msra.mxu1 %vm160_vm2, %v325_v14  ;;  %1752 = vmatprep.mubr.msk.f32.mxu1 %vm1977_vm1, %v1976_v6 }
 0x364   :  { %1802 = vmatprep.mubr.msk.f32.mxu0 %vm1977_vm1, %v1976_v6  ;;  %1755 = vmatprep.subr.mxu1 %v1976_v6 }
 0x365   :  { %v1178_v37 = vpop.permute.xlu1 %1177 }
 0x366   :  { %1753 = vmatmul.mubr.msk.f32.vlgmr.msra.gmra.mxu1 %vm160_vm2, %v323_v15  ;;  %1801 = vmatpush3.xpose.msk.msra.mxu0 %vm160_vm2, %v1178_v37 }
 0x367   :  { %1810 = vmatprep.subr.mxu0 %v1976_v6  ;;  %1757 = vmatprep.mubr.msk.f32.mxu1 %vm1977_vm1, %v1976_v6 }
 0x369   :  { %v1343_v39 = vpop.permute.xlu1 %1342  ;;  %1803 = vmatmul.mubr.msk.f32.vlgmr.msra.gmra.mxu0 %vm160_vm2, %v1176_v38 }
 0x36a   :  { %1811 = vmatpush3.xpose.msk.msra.mxu0 %vm160_vm2, %v1343_v39  ;;  %1812 = vmatprep.mubr.msk.f32.mxu0 %vm1977_vm1, %v1976_v6 }
 0x36d   :  { %1813 = vmatmul.mubr.msk.f32.vlgmr.msra.gmra.mxu0 %vm160_vm2, %v1341_v40 }
 0x416   :  { %v726_v41 = vpop.f32.mrf.mxu0 }
 0x417   :  { %v730_v43 = vsel %vm160_vm2, %v726_v41, -inf }
 0x418   :  { %731 = vmax.xlane.f32.xlu0 %v730_v43  ;;  %v1774_v44 = vpop.f32.mrf.mxu0 }
 0x41d   :  { %v919_v46 = vpop.f32.mrf.mxu0 }
 0x41e   :  { %v923_v59 = vsel %vm160_vm2, %v919_v46, -inf }
 0x41f   :  { %v1784_v48 = vpop.f32.mrf.mxu0 }
 0x422   :  { %v2134_v49 = vpop.f32.mrf.mxu1  ;;  %v1084_v50 = vpop.f32.mrf.mxu0 }
 0x423   :  { %v1088_v51 = vsel %vm160_vm2, %v1084_v50, -inf }
 0x424   :  { %1089 = vmax.xlane.f32.xlu0 %v1088_v51  ;;  %v1749_v52 = vpop.f32.mrf.mxu1  ;;  %v1794_v53 = vpop.f32.mrf.mxu0 }
 0x426   :  { %v396_v54 = vpop.f32.mrf.mxu1 }
 0x427   :  { %v400_v55 = vsel %vm160_vm2, %v396_v54, -inf }
 0x428   :  { %401 = vmax.xlane.f32.xlu1 %v400_v55  ;;  %v1754_v56 = vpop.f32.mrf.mxu1 }
 0x429   :  { %v1249_v57 = vpop.f32.mrf.mxu0 }
 0x42a   :  { %v1253_v0 = vsel %vm160_vm2, %v1249_v57, -inf }
 0x42b   :  { %v1804_v58 = vpop.f32.mrf.mxu0 }
 0x42c   :  { %924 = vmax.xlane.f32.xlu1 %v923_v59 }
 0x42d   :  { %v1414_v60 = vpop.f32.mrf.mxu0 }
 0x42e   :  { %v1418_v61 = vsel %vm160_vm2, %v1414_v60, -inf }
 0x42f   :  { %1419 = vmax.xlane.f32.xlu0 %v1418_v61  ;;  %v1814_v63 = vpop.f32.mrf.mxu0 }
 0x430   :  { %1254 = vmax.xlane.f32.xlu1 %v1253_v0 }
 0x433   :  { %572 = vadd.xlane.f32.xlu0 %v571_v1 }
 0x4a1   :  { %v732_v2 = vpop.xlane.xlu0 %731 }
 0x4a2   :  { %v733_v3 = vsub.f32 %v726_v41, %v732_v2  ;;  %v1535_v2 = vld [vmem:[#allocation7 + $0x18] sm:$0xff] }
 0x4a3   :  { %1820 = vmatprep.subr.mxu0 %v1535_v2 }
 0x4a4   :  { %v734_v4 = vmul.f32 1.442695, %v733_v3  ;;  %v1534_v3 = vld [vmem:[#allocation7 + $0x10] sm:$0xff]  ;;  %1821 = vmatpush3.msra.mxu0 %v1535_v2 }
 0x4a5   :  { %1822 = vmatprep.subr.mxu0 %v1534_v3 }
 0x4a6   :  { %1859 = vpow2.f32 %v734_v4  ;;  %1823 = vmatpush3.msra.mxu0 %v1534_v3 }
 0x4ad   :  { %v1090_v5 = vpop.xlane.xlu0 %1089 }
 0x4ae   :  { %v1091_v7 = vsub.f32 %v1084_v50, %v1090_v5 }
 0x4b0   :  { %v1092_v8 = vmul.f32 1.442695, %v1091_v7  ;;  %v1532_v7 = vld [vmem:[#allocation7] sm:$0xff] }
 0x4b1   :  { %v402_v10 = vpop.xlane.xlu1 %401 }
 0x4b2   :  { %1861 = vpow2.f32 %v1092_v8  ;;  %v403_v31 = vsub.f32 %v396_v54, %v402_v10 }
 0x4b3   :  { %v2145_v12 = vpop.eup %1859 }
 0x4b4   :  { %v736_v13 = vsel %vm160_vm2, %v2145_v12, 0.0  ;;  %v404_v32 = vmul.f32 1.442695, %v403_v31 }
 0x4b5   :  { %737 = vadd.xlane.f32.xlu1 %v736_v13  ;;  %v925_v14 = vpop.xlane.xlu1 %924 }
 0x4b6   :  { %v926_v15 = vsub.f32 %v919_v46, %v925_v14 }
 0x4b8   :  { %v927_v16 = vmul.f32 1.442695, %v926_v15  ;;  %v1420_v17 = vpop.xlane.xlu0 %1419 }
 0x4b9   :  { %v1421_v18 = vsub.f32 %v1414_v60, %v1420_v17  ;;  %v1255_v19 = vpop.xlane.xlu1 %1254 }
 0x4ba   :  { %1863 = vpow2.f32 %v927_v16  ;;  %v1256_v20 = vsub.f32 %v1249_v57, %v1255_v19 }
 0x4bb   :  { %v1422_v21 = vmul.f32 1.442695, %v1421_v18 }
 0x4bc   :  { %v1257_v22 = vmul.f32 1.442695, %v1256_v20  ;;  %v573_v36 = vpop.xlane.xlu0 %572 }
 0x4bd   :  { %1865 = vpow2.f32 %v1422_v21 }
 0x4be   :  { %1867 = vpow2.f32 %v1257_v22 }
 0x4bf   :  { %v2149_v23 = vpop.eup %1861  ;;  %1869 = vpow2.f32 %v404_v32 }
 0x4c0   :  { %v1094_v24 = vsel %vm160_vm2, %v2149_v23, 0.0 }
 0x4c1   :  { %1095 = vadd.xlane.f32.xlu1 %v1094_v24 }
 0x4c7   :  { %v2153_v25 = vpop.eup %1863 }
 0x4c8   :  { %v929_v26 = vsel %vm160_vm2, %v2153_v25, 0.0 }
 0x4c9   :  { %930 = vadd.xlane.f32.xlu0 %v929_v26 }
 0x4ca   :  { %v2157_v27 = vpop.eup %1865 }
 0x4cb   :  { %v2159_v28 = vpop.eup %1867  ;;  %v1424_v29 = vsel %vm160_vm2, %v2157_v27, 0.0 }
 0x4cc   :  { %1425 = vadd.xlane.f32.xlu1 %v1424_v29  ;;  %v1259_v30 = vsel %vm160_vm2, %v2159_v28, 0.0  ;;  %v1870_v33 = vpop.eup %1869 }
 0x4cd   :  { %1260 = vadd.xlane.f32.xlu0 %v1259_v30  ;;  %v406_v34 = vsel %vm160_vm2, %v1870_v33, 0.0 }
 0x4dd   :  { %576 = vrot.lane.b32.xlu1 %v2054_v11, %s1986_s16 }
 0x4e3   :  { %411 = vrot.lane.b32.xlu0 %v2054_v11, %s1987_s17 }
 0x4e7   :  { %934 = vrot.lane.b32.xlu0 %v2052_v9, %s1978_s9 }
 0x4eb   :  { %1264 = vrot.lane.b32.xlu0 %v2052_v9, %s1986_s16 }
 0x501   :  { %407 = vadd.xlane.f32.xlu1 %v406_v34 }
 0x512   :  { %741 = vrot.lane.b32.xlu1 %v2054_v11, %s1988_s18 }
 0x516   :  { %1099 = vrot.lane.b32.xlu1 %v2052_v9, %s1987_s17 }
 0x51a   :  { %1429 = vrot.lane.b32.xlu1 %v2052_v9, %s1988_s18 }
 0x53e   :  { %v738_v40 = vpop.xlane.xlu1 %737 }
 0x54a   :  { %v1096_v41 = vpop.xlane.xlu1 %1095 }
 0x552   :  { %v931_v37 = vpop.xlane.xlu0 %930 }
 0x555   :  { %v1426_v42 = vpop.xlane.xlu1 %1425 }
 0x556   :  { %v1261_v38 = vpop.xlane.xlu0 %1260 }
 0x559   :  { %v577_v43 = vpop.permute.xlu1 %576 }
 0x55a   :  { %v412_v39 = vpop.permute.xlu0 %411 }
 0x55b   :  { %1756 = vmatpush3.msra.mxu1 %v412_v39 }
 0x55c   :  { %1765 = vmatprep.subr.mxu1 %v1976_v6 }
 0x55e   :  { %v935_v52 = vpop.permute.xlu0 %934 }
 0x562   :  { %v1265_v58 = vpop.permute.xlu0 %1264 }
 0x58a   :  { %v408_v44 = vpop.xlane.xlu1 %407 }
 0x58b   :  { %1871 = vrcp.f32 %v408_v44 }
 0x58c   :  { %1873 = vrcp.f32 %v573_v36 }
 0x58d   :  { %1875 = vrcp.f32 %v738_v40 }
 0x58e   :  { %1877 = vrcp.f32 %v931_v37  ;;  %v742_v48 = vpop.permute.xlu1 %741 }
 0x58f   :  { %1879 = vrcp.f32 %v1096_v41 }
 0x590   :  { %1881 = vrcp.f32 %v1261_v38 }
 0x591   :  { %1883 = vrcp.f32 %v1426_v42 }
 0x592   :  { %v1100_v55 = vpop.permute.xlu1 %1099 }
 0x596   :  { %v1430_v61 = vpop.permute.xlu1 %1429 }
 0x598   :  { %v1872_v11 = vpop.eup %1871 }
 0x599   :  { %v2175_v45 = vmul.f32 %v1872_v11, %v1870_v33  ;;  %v1874_v9 = vpop.eup %1873 }
 0x59a   :  { %v2183_v46 = vmul.f32 %v1874_v9, %v2140_v62  ;;  %v1876_v47 = vpop.eup %1875 }
 0x59b   :  { %1758 = vmatmul.mubr.msk.f32.vlgmr.msra.gmra.mxu1 %vm160_vm2, %v2175_v45  ;;  %v2191_v50 = vmul.f32 %v1876_v47, %v2145_v12  ;;  %v1878_v51 = vpop.eup %1877 }
 0x59c   :  { %1766 = vmatpush3.msra.mxu1 %v577_v43  ;;  %1767 = vmatprep.mubr.msk.f32.mxu1 %vm1977_vm1, %v1976_v6  ;;  %v2199_v53 = vmul.f32 %v1878_v51, %v2153_v25  ;;  %v1880_v54 = vpop.eup %1879 }
 0x59d   :  { %1775 = vmatprep.subr.mxu1 %v1976_v6  ;;  %v1098_v56 = vmul.f32 %v1880_v54, %v2149_v23  ;;  %v1882_v57 = vpop.eup %1881 }
 0x59e   :  { %v1263_v59 = vmul.f32 %v1882_v57, %v2159_v28  ;;  %v1884_v60 = vpop.eup %1883 }
 0x59f   :  { %1768 = vmatmul.mubr.msk.f32.vlgmr.msra.gmra.mxu1 %vm160_vm2, %v2183_v46  ;;  %v1428_v62 = vmul.f32 %v1884_v60, %v2157_v27 }
 0x5a0   :  { %1776 = vmatpush3.msra.mxu1 %v742_v48  ;;  %1777 = vmatprep.mubr.msk.f32.mxu1 %vm1977_vm1, %v1976_v6 }
 0x5a1   :  { %1785 = vmatprep.subr.mxu1 %v1976_v6 }
 0x5a3   :  { %1778 = vmatmul.mubr.msk.f32.vlgmr.msra.gmra.mxu1 %vm160_vm2, %v2191_v50 }
 0x5a4   :  { %1786 = vmatpush3.msra.mxu1 %v935_v52  ;;  %1787 = vmatprep.mubr.msk.f32.mxu1 %vm1977_vm1, %v1976_v6 }
 0x5a5   :  { %1795 = vmatprep.subr.mxu1 %v1976_v6 }
 0x5a7   :  { %1788 = vmatmul.mubr.msk.f32.vlgmr.msra.gmra.mxu1 %vm160_vm2, %v2199_v53 }
 0x5a8   :  { %1796 = vmatpush3.msra.mxu1 %v1100_v55  ;;  %1797 = vmatprep.mubr.msk.f32.mxu1 %vm1977_vm1, %v1976_v6 }
 0x5a9   :  { %1805 = vmatprep.subr.mxu1 %v1976_v6 }
 0x5ab   :  { %1798 = vmatmul.mubr.msk.f32.vlgmr.msra.gmra.mxu1 %vm160_vm2, %v1098_v56 }
 0x5ac   :  { %1806 = vmatpush3.msra.mxu1 %v1265_v58  ;;  %1807 = vmatprep.mubr.msk.f32.mxu1 %vm1977_vm1, %v1976_v6 }
 0x5ad   :  { %1815 = vmatprep.subr.mxu1 %v1976_v6 }
 0x5af   :  { %1808 = vmatmul.mubr.msk.f32.vlgmr.msra.gmra.mxu1 %vm160_vm2, %v1263_v59 }
 0x5b0   :  { %1816 = vmatpush3.msra.mxu1 %v1430_v61  ;;  %1817 = vmatprep.mubr.msk.f32.mxu1 %vm1977_vm1, %v1976_v6  ;;  %v1533_v6 = vld [vmem:[#allocation7 + $0x8] sm:$0xff] }
 0x5b1   :  { %1824 = vmatprep.subr.mxu0 %v1533_v6 }
 0x5b2   :  { %1825 = vmatpush3.msra.mxu0 %v1533_v6 }
 0x5b3   :  { %1818 = vmatmul.mubr.msk.f32.vlgmr.msra.gmra.mxu1 %vm160_vm2, %v1428_v62  ;;  %1826 = vmatprep.subr.mxu0 %v1532_v7 }
 0x5b4   :  { %1827 = vmatpush3.msra.mxu0 %v1532_v7 }
 0x65b   :  { %v483_v63 = vpop.f32.mrf.mxu1 }
 0x65c   :  { %818 = vrot.lane.b32.xlu0 %v483_v63, %s1974_s24 }
 0x65d   :  { %v1759_v0 = vpop.f32.mrf.mxu1 }
 0x65f   :  { %v648_v1 = vpop.f32.mrf.mxu1 }
 0x660   :  { %822 = vrot.lane.b32.xlu1 %v648_v1, %s1989_s19 }
 0x661   :  { %v1769_v4 = vpop.f32.mrf.mxu1 }
 0x663   :  { %v813_v5 = vpop.f32.mrf.mxu1 }
 0x664   :  { %826 = vrot.lane.b32.xlu1 %v813_v5, %s1990_s20 }
 0x665   :  { %v1779_v8 = vpop.f32.mrf.mxu1 }
 0x667   :  { %v1006_v10 = vpop.f32.mrf.mxu1 }
 0x669   :  { %v1789_v12 = vpop.f32.mrf.mxu1 }
 0x66b   :  { %v1171_v13 = vpop.f32.mrf.mxu1 }
 0x66c   :  { %1506 = vrot.lane.b32.xlu0 %v1171_v13, %s1974_s24 }
 0x66d   :  { %v1799_v14 = vpop.f32.mrf.mxu1 }
 0x66f   :  { %v1336_v15 = vpop.f32.mrf.mxu1 }
 0x670   :  { %1510 = vrot.lane.b32.xlu0 %v1336_v15, %s1989_s19 }
 0x671   :  { %v1809_v16 = vpop.f32.mrf.mxu1 }
 0x673   :  { %v1501_v17 = vpop.f32.mrf.mxu1 }
 0x674   :  { %834 = vrot.lane.b32.xlu0 %v2175_v45, %s1974_s24  ;;  %1514 = vrot.lane.b32.xlu1 %v1501_v17, %s1990_s20 }
 0x675   :  { %v1819_v18 = vpop.f32.mrf.mxu1 }
 0x678   :  { %840 = vrot.lane.b32.xlu0 %v2191_v50, %s1990_s20  ;;  %837 = vrot.lane.b32.xlu1 %v2183_v46, %s1989_s19 }
 0x67c   :  { %1523 = vrot.lane.b32.xlu0 %v1263_v59, %s1989_s19  ;;  %1520 = vrot.lane.b32.xlu1 %v1098_v56, %s1974_s24 }
 0x680   :  { %1526 = vrot.lane.b32.xlu1 %v1428_v62, %s1990_s20 }
 0x6ce   :  { %v819_v19 = vpop.permute.xlu0 %818 }
 0x6cf   :  { %v829_v21 = vsel %vm160_vm2, %v2134_v49, %v819_v19 }
 0x6d2   :  { %v823_v20 = vpop.permute.xlu1 %822 }
 0x6d3   :  { %v831_v22 = vsel %vm830_vm3, %v829_v21, %v823_v20 }
 0x6d6   :  { %v827_v23 = vpop.permute.xlu1 %826 }
 0x6d7   :  { %v833_v24 = vsel %vm832_vm4, %v831_v22, %v827_v23 }
 0x6d8   :  { %1828 = vmatprep.mubr.msk.f32.mxu0 %vm75_vm0, %v833_v24 }
 0x6de   :  { %v1507_v25 = vpop.permute.xlu0 %1506 }
 0x6df   :  { %v1517_v27 = vsel %vm160_vm2, %v1006_v10, %v1507_v25 }
 0x6e2   :  { %v1511_v26 = vpop.permute.xlu0 %1510 }
 0x6e3   :  { %v1518_v28 = vsel %vm830_vm3, %v1517_v27, %v1511_v26 }
 0x6e6   :  { %v835_v29 = vpop.permute.xlu0 %834  ;;  %v1515_v30 = vpop.permute.xlu1 %1514 }
 0x6e7   :  { %v1519_v31 = vsel %vm832_vm4, %v1518_v28, %v1515_v30  ;;  %v843_v49 = vsel %vm160_vm2, %v2111_v35, %v835_v29  ;;  %v1682_v35 = vld [vmem:[%s2260_s4] ss:$0 sm:$0xff] }
 0x6e8   :  { %1829 = vmatmul.mubr.msk.f32.vlgmr.msra.gmra.mxu0 %vm75_vm0, %v1519_v31 }
 0x6ea   :  { %v841_v32 = vpop.permute.xlu0 %840  ;;  %v838_v33 = vpop.permute.xlu1 %837 }
 0x6eb   :  { %v844_v34 = vsel %vm830_vm3, %v843_v49, %v838_v33 }
 0x6ec   :  { %v845_v36 = vsel %vm832_vm4, %v844_v34, %v841_v32 }
 0x6ed   :  { %1626 = vrot.lane.b32.xlu0 %v845_v36, %s1991_s21 }
 0x6ee   :  { %v1521_v37 = vpop.permute.xlu1 %1520  ;;  %v1524_v38 = vpop.permute.xlu0 %1523 }
 0x6ef   :  { %v1529_v39 = vsel %vm160_vm2, %v2199_v53, %v1521_v37 }
 0x6f0   :  { %v1530_v41 = vsel %vm830_vm3, %v1529_v39, %v1524_v38 }
 0x6f2   :  { %v1527_v40 = vpop.permute.xlu1 %1526 }
 0x6f3   :  { %v1531_v42 = vsel %vm832_vm4, %v1530_v41, %v1527_v40 }
 0x6f4   :  { %1628 = vrot.lane.b32.xlu1 %v1531_v42, %s1991_s21 }
 0x75f   :  { %v1627_v47 = vpop.permute.xlu0 %1626 }
 0x766   :  { %v1629_v11 = vpop.permute.xlu1 %1628 }
 0x7a8   :  { %v1830_v43 = vpop.f32.mrf.mxu0 }
 0x7a9   :  { %v1621_v44 = vadd.f32 %v1830_v43, %v1682_v35 }
 0x7aa   :  { %v1615_v45 = vpop.f32.mrf.mxu0 }
 0x7ab   :  { %v1633_v9 = vsel %vm75_vm0, %v1621_v44, %v1629_v11  ;;  %v1616_v46 = vadd.f32 %v1682_v35, %v1615_v45 }
 0x7ac   :  { %1636 = vst.msk [vmem:[#allocation8 + $0x8] sm:$0xff] %vm1634_vm5, %v1633_v9 }
 0x7ad   :  { %v1632_v48 = vsel %vm75_vm0, %v1616_v46, %v1627_v47 }
 0x7ae   :  { %1635 = vst.msk [vmem:[#allocation8] sm:$0xff] %vm1634_vm5, %v1632_v48 }
 0x7af   :  { %1956 = shalt.err (!%p1953_p5)
}
 0x7b0   :  { %1648 = dma.vmem_to_hbm [thread:$0]  %s1643_s27, 256, %s2261_s5, [#allocation4], %s1973_s23, %s1973_s23, %s1974_s24  }
 0x7b1   :  { %1969 = dma.done.wait [#allocation4], 256  }
 0x7b2   :  { %1970 = vsyncadd [#allocation4], 4294967040 }
 0x7b3   :  { %1652 = vsyncpa [#allocation3], 1 }
 0x7b4   :  { %1653 = vsyncpa [#allocation6], 1 }
 0x7b5   :  { %1654 = vsyncpa [#allocation4], 1 }

</bundles_post_ra>
